<compile_context>
chip_gen: v7x
topology: tpu7x:2x2x1
jax: 0.10.0
libtpu: 0.0.40
codegen_flags: <defaults>
</compile_context>

<pallas_src>
import functools
import math

import numpy as np
import jax
import jax.numpy as jnp
from jax.experimental import pallas as pl
from jax.experimental.pallas import tpu as pltpu


# ---------------------------------------------------------------------------
# Kernel
# ---------------------------------------------------------------------------
def _conv_rows(a, w_ref, b_ref):
    """3x3 'same' conv on one image stored as rows of width W*C_pad (128 lanes).

    a:     (H, WC) f32 activation, channels fastest, WC = W * C_pad.
    w_ref: (3*WC, WC) block-banded weight slab (rows [dy*WC:(dy+1)*WC] hold the
           banded slab of kernel row dy; the band encodes horizontal padding).
    b_ref: (1, WC) bias tiled across W (zero in padded channels).
    """
    h, wc = a.shape
    rows = jax.lax.broadcasted_iota(jnp.int32, (h, wc), 0)

    # Row y of a_dn = a[y-1] (zero above the image); row y of a_up = a[y+1]
    # (zero below).  pltpu.roll rides the XLU, the mask is one VPU select.
    a_dn = jnp.where(rows == 0, 0.0, pltpu.roll(a, shift=1, axis=0))
    a_up = jnp.where(rows == h - 1, 0.0, pltpu.roll(a, shift=h - 1, axis=0))

    # Single MXU contraction per conv: (H, 3*WC) @ (3*WC, WC).
    a_stack = jnp.concatenate([a_dn, a, a_up], axis=1)
    out = jnp.dot(a_stack, w_ref[...], preferred_element_type=jnp.float32)
    return out + b_ref[...]                      # bias added exactly once


def resblock_kernel(x_ref, w1_ref, b1_ref, w2_ref, b2_ref, o_ref):
    x = x_ref[0]                                             # (H, WC), 128 lanes
    h = jnp.maximum(_conv_rows(x, w1_ref, b1_ref), 0.0)      # conv1 + bias + ReLU
    y = _conv_rows(h, w2_ref, b2_ref)                        # conv2 + bias
    o_ref[0] = x + y                                         # residual add


# ---------------------------------------------------------------------------
# One-time parameter packing (host-side numpy: no XLA ops in the hot path)
# ---------------------------------------------------------------------------
def _packed_conv_weight(w_oihw, W, c_pad):
    """OIHW (Cout, Cin, 3, 3) -> (3*W*c_pad, W*c_pad) stacked block-banded slab.

    slab[dy*WC + xin*c_pad + ci, xout*c_pad + co] = w[co, ci, dy, dx] with
    dx = xin - xout + 1, zero outside the 3-wide band (horizontal 'same' pad)
    and zero in padded channels.
    """
    w = np.asarray(w_oihw, dtype=np.float32)
    c_out, c_in = w.shape[0], w.shape[1]
    wc = W * c_pad
    slab = np.zeros((3 * wc, wc), dtype=np.float32)
    for dy in range(3):
        for dx in range(3):
            tap = w[:, :, dy, dx].T                          # (Cin, Cout)
            for xo in range(W):
                xi = xo + dx - 1
                if 0 <= xi < W:
                    r0 = dy * wc + xi * c_pad
                    c0 = xo * c_pad
                    slab[r0:r0 + c_in, c0:c0 + c_out] = tap
    return jnp.asarray(slab)


def _packed_bias(b, W, c_pad):
    b = np.asarray(b, dtype=np.float32)
    row = np.zeros((W, c_pad), dtype=np.float32)
    row[:, : b.shape[0]] = b[None, :]
    return jnp.asarray(row.reshape(1, W * c_pad))


def prepare_resblock_params(w1_oihw, b1, w2_oihw, b2, *, W, C):
    """Build MXU-ready packed parameters once (outside the per-call hot path)."""
    per = 128 // math.gcd(W, 128)                # channel multiple for 128 lanes
    c_pad = max(per, ((C + per - 1) // per) * per)
    assert (W * c_pad) % 128 == 0
    return dict(
        w1=_packed_conv_weight(w1_oihw, W, c_pad),
        b1=_packed_bias(b1, W, c_pad),
        w2=_packed_conv_weight(w2_oihw, W, c_pad),
        b2=_packed_bias(b2, W, c_pad),
    )


# ---------------------------------------------------------------------------
# Pallas call wrappers
# ---------------------------------------------------------------------------
@jax.jit
def resblock_pallas_nhwc(x_nhwc, w1_slab, b1_row, w2_slab, b2_row):
    """Preferred entry point: NHWC in / NHWC out, no relayout transposes."""
    B, H, W, C = x_nhwc.shape
    WC = w1_slab.shape[1]
    c_pad = WC // W

    x = x_nhwc.astype(jnp.float32)
    if c_pad != C:                                 # pad channels -> 128 lanes/row
        x = jnp.pad(x, ((0, 0), (0, 0), (0, 0), (0, c_pad - C)))
    x_rows = x.reshape(B, H, WC)

    out_rows = pl.pallas_call(
        resblock_kernel,
        out_shape=jax.ShapeDtypeStruct((B, H, WC), jnp.float32),
        grid=(B,),
        in_specs=[
            pl.BlockSpec((1, H, WC), lambda b: (b, 0, 0)),       # per-image tile
            pl.BlockSpec((3 * WC, WC), lambda b: (0, 0)),        # conv1 slab
            pl.BlockSpec((1, WC), lambda b: (0, 0)),             # conv1 bias row
            pl.BlockSpec((3 * WC, WC), lambda b: (0, 0)),        # conv2 slab
            pl.BlockSpec((1, WC), lambda b: (0, 0)),             # conv2 bias row
        ],
        out_specs=pl.BlockSpec((1, H, WC), lambda b: (b, 0, 0)),
        compiler_params=pltpu.CompilerParams(
            dimension_semantics=("parallel",),       # images shard across v7x TCs
            vmem_limit_bytes=4 * 1024 * 1024,        # actual footprint < 1 MiB
        ),
    )(x_rows, w1_slab, b1_row, w2_slab, b2_row)

    out = out_rows.reshape(B, H, W, c_pad)
    if c_pad != C:
        out = out[..., :C]
    return out


@jax.jit
def resblock_pallas_nchw(x_nchw, w1_slab, b1_row, w2_slab, b2_row):
    """NCHW interface matching the PyTorch module (adds two layout transposes)."""
    x_nhwc = jnp.transpose(x_nchw, (0, 2, 3, 1))
    out_nhwc = resblock_pallas_nhwc(x_nhwc, w1_slab, b1_row, w2_slab, b2_row)
    return jnp.transpose(out_nhwc, (0, 3, 1, 2))


# ---------------------------------------------------------------------------
# Pure-JAX reference (torch.nn cross-correlation semantics)
# ---------------------------------------------------------------------------
def resblock_reference(x_nchw, w1_oihw, b1, w2_oihw, b2):
    dn = ('NCHW', 'OIHW', 'NCHW')
    h = jax.lax.conv_general_dilated(x_nchw, w1_oihw, (1, 1), 'SAME',
                                     dimension_numbers=dn)
    h = jnp.maximum(h + b1.reshape(1, -1, 1, 1), 0.0)
    y = jax.lax.conv_general_dilated(h, w2_oihw, (1, 1), 'SAME',
                                     dimension_numbers=dn)
    y = y + b2.reshape(1, -1, 1, 1)
    return x_nchw + y


if __name__ == "__main__":
    B, C, H, W = 2, 4, 16, 16  # dim = 4

    key = jax.random.PRNGKey(0)
    kx, kw1, kb1, kw2, kb2 = jax.random.split(key, 5)

    x = jax.random.normal(kx, (B, C, H, W), dtype=jnp.float32)
    # nn.Conv2d(dim, dim, 3, padding=1) shaped parameters
    w1 = 0.1 * jax.random.normal(kw1, (C, C, 3, 3), dtype=jnp.float32)
    b1 = 0.1 * jax.random.normal(kb1, (C,), dtype=jnp.float32)
    w2 = 0.1 * jax.random.normal(kw2, (C, C, 3, 3), dtype=jnp.float32)
    b2 = 0.1 * jax.random.normal(kb2, (C,), dtype=jnp.float32)

    # One-time packing of weights/biases into MXU-ready banded slabs.
    params = prepare_resblock_params(w1, b1, w2, b2, W=W, C=C)

    out = resblock_pallas_nchw(x, params["w1"], params["b1"],
                               params["w2"], params["b2"])
    out = jax.block_until_ready(out)

    ref = resblock_reference(x, w1, b1, w2, b2)
    assert out.shape == (B, C, H, W)
    assert jnp.allclose(out, ref, atol=1e-4, rtol=1e-4), "mismatch vs reference"

    print("KERNEL_OK")
</pallas_src>

<mosaic_0001>
module attributes {stable_mosaic.version = 11 : i64} {
  func.func @resblock_kernel(%arg0: i32, %arg1: memref<1x16x128xf32, #tpu.memory_space<vmem>>, %arg2: memref<384x128xf32, #tpu.memory_space<vmem>>, %arg3: memref<1x128xf32, #tpu.memory_space<vmem>>, %arg4: memref<384x128xf32, #tpu.memory_space<vmem>>, %arg5: memref<1x128xf32, #tpu.memory_space<vmem>>, %arg6: memref<1x16x128xf32, #tpu.memory_space<vmem>>) attributes {dimension_semantics = [#tpu.dimension_semantics<parallel>], iteration_bounds = array<i64: 2>, scalar_prefetch = 0 : i64, scratch_operands = 0 : i64, tpu.core_type = #tpu.core_type<tc>, window_params = [{transform_indices = @transform_0, window_bounds = array<i64: 1, 16, 128>}, {pipeline_mode = #tpu.pipeline_mode<synchronous>, transform_indices = @transform_1, window_bounds = array<i64: 384, 128>}, {pipeline_mode = #tpu.pipeline_mode<synchronous>, transform_indices = @transform_2, window_bounds = array<i64: 1, 128>}, {pipeline_mode = #tpu.pipeline_mode<synchronous>, transform_indices = @transform_3, window_bounds = array<i64: 384, 128>}, {pipeline_mode = #tpu.pipeline_mode<synchronous>, transform_indices = @transform_4, window_bounds = array<i64: 1, 128>}, {transform_indices = @transform_5, window_bounds = array<i64: 1, 16, 128>}]} {
    %c0 = arith.constant 0 : index
    %c0_0 = arith.constant 0 : index
    %c0_1 = arith.constant 0 : index
    %0 = vector.load %arg1[%c0, %c0_0, %c0_1] : memref<1x16x128xf32, #tpu.memory_space<vmem>>, vector<1x16x128xf32>
    %1 = vector.shape_cast %0 : vector<1x16x128xf32> to vector<16x128xf32>
    %2 = tpu.iota {dimensions = array<i32: 0>} : vector<16x128xi32>
    %c0_i32 = arith.constant 0 : i32
    %3 = vector.broadcast %c0_i32 : i32 to vector<16x128xi32>
    %4 = arith.cmpi eq, %2, %3 : vector<16x128xi32>
    %c1_i32 = arith.constant 1 : i32
    %5 = tpu.dynamic_rotate %1 by %c1_i32 dim 0 : vector<16x128xf32>, i32 -> vector<16x128xf32>
    %cst = arith.constant 0.000000e+00 : f32
    %6 = vector.broadcast %cst : f32 to vector<16x128xf32>
    %7 = arith.select %4, %6, %5 : vector<16x128xi1>, vector<16x128xf32>
    %c15_i32 = arith.constant 15 : i32
    %8 = vector.broadcast %c15_i32 : i32 to vector<16x128xi32>
    %9 = arith.cmpi eq, %2, %8 : vector<16x128xi32>
    %c15_i32_2 = arith.constant 15 : i32
    %10 = tpu.dynamic_rotate %1 by %c15_i32_2 dim 0 : vector<16x128xf32>, i32 -> vector<16x128xf32>
    %cst_3 = arith.constant 0.000000e+00 : f32
    %11 = vector.broadcast %cst_3 : f32 to vector<16x128xf32>
    %12 = arith.select %9, %11, %10 : vector<16x128xi1>, vector<16x128xf32>
    %13 = tpu.concatenate %7, %1, %12 in 1 : vector<16x128xf32>, vector<16x128xf32>, vector<16x128xf32> -> vector<16x384xf32>
    %c0_4 = arith.constant 0 : index
    %c0_5 = arith.constant 0 : index
    %14 = vector.load %arg2[%c0_4, %c0_5] : memref<384x128xf32, #tpu.memory_space<vmem>>, vector<384x128xf32>
    %cst_6 = arith.constant dense<0.000000e+00> : vector<16x128xf32>
    %15 = tpu.matmul %13, %14, %cst_6 {dimension_numbers = #tpu.dot_dimension_numbers<[1], [0], [0], [1], [0, 0, 1, 1], [], []>} : vector<16x384xf32>, vector<384x128xf32>, vector<16x128xf32> -> vector<16x128xf32>
    %c0_7 = arith.constant 0 : index
    %c0_8 = arith.constant 0 : index
    %16 = vector.load %arg3[%c0_7, %c0_8] : memref<1x128xf32, #tpu.memory_space<vmem>>, vector<1x128xf32>
    %17 = vector.broadcast %16 : vector<1x128xf32> to vector<16x128xf32>
    %18 = arith.addf %15, %17 : vector<16x128xf32>
    %cst_9 = arith.constant 0.000000e+00 : f32
    %19 = vector.broadcast %cst_9 : f32 to vector<16x128xf32>
    %20 = arith.maximumf %18, %19 : vector<16x128xf32>
    %21 = tpu.iota {dimensions = array<i32: 0>} : vector<16x128xi32>
    %c0_i32_10 = arith.constant 0 : i32
    %22 = vector.broadcast %c0_i32_10 : i32 to vector<16x128xi32>
    %23 = arith.cmpi eq, %21, %22 : vector<16x128xi32>
    %c1_i32_11 = arith.constant 1 : i32
    %24 = tpu.dynamic_rotate %20 by %c1_i32_11 dim 0 : vector<16x128xf32>, i32 -> vector<16x128xf32>
    %cst_12 = arith.constant 0.000000e+00 : f32
    %25 = vector.broadcast %cst_12 : f32 to vector<16x128xf32>
    %26 = arith.select %23, %25, %24 : vector<16x128xi1>, vector<16x128xf32>
    %c15_i32_13 = arith.constant 15 : i32
    %27 = vector.broadcast %c15_i32_13 : i32 to vector<16x128xi32>
    %28 = arith.cmpi eq, %21, %27 : vector<16x128xi32>
    %c15_i32_14 = arith.constant 15 : i32
    %29 = tpu.dynamic_rotate %20 by %c15_i32_14 dim 0 : vector<16x128xf32>, i32 -> vector<16x128xf32>
    %cst_15 = arith.constant 0.000000e+00 : f32
    %30 = vector.broadcast %cst_15 : f32 to vector<16x128xf32>
    %31 = arith.select %28, %30, %29 : vector<16x128xi1>, vector<16x128xf32>
    %32 = tpu.concatenate %26, %20, %31 in 1 : vector<16x128xf32>, vector<16x128xf32>, vector<16x128xf32> -> vector<16x384xf32>
    %c0_16 = arith.constant 0 : index
    %c0_17 = arith.constant 0 : index
    %33 = vector.load %arg4[%c0_16, %c0_17] : memref<384x128xf32, #tpu.memory_space<vmem>>, vector<384x128xf32>
    %cst_18 = arith.constant dense<0.000000e+00> : vector<16x128xf32>
    %34 = tpu.matmul %32, %33, %cst_18 {dimension_numbers = #tpu.dot_dimension_numbers<[1], [0], [0], [1], [0, 0, 1, 1], [], []>} : vector<16x384xf32>, vector<384x128xf32>, vector<16x128xf32> -> vector<16x128xf32>
    %c0_19 = arith.constant 0 : index
    %c0_20 = arith.constant 0 : index
    %35 = vector.load %arg5[%c0_19, %c0_20] : memref<1x128xf32, #tpu.memory_space<vmem>>, vector<1x128xf32>
    %36 = vector.broadcast %35 : vector<1x128xf32> to vector<16x128xf32>
    %37 = arith.addf %34, %36 : vector<16x128xf32>
    %38 = arith.addf %1, %37 : vector<16x128xf32>
    %c0_21 = arith.constant 0 : index
    %c0_22 = arith.constant 0 : index
    %c0_23 = arith.constant 0 : index
    %39 = vector.load %arg6[%c0_21, %c0_22, %c0_23] : memref<1x16x128xf32, #tpu.memory_space<vmem>>, vector<1x16x128xf32>
    %40 = vector.shape_cast %39 : vector<1x16x128xf32> to vector<16x128xf32>
    %41 = vector.shape_cast %38 : vector<16x128xf32> to vector<1x16x128xf32>
    tpu.vector_store %arg6[%c0_21, %c0_22, %c0_23], %41 {strides = array<i32>} : memref<1x16x128xf32, #tpu.memory_space<vmem>>, vector<1x16x128xf32>,
    return
  }
  func.func @transform_0(%arg0: i32) -> (i32, i32, i32) {
    %c0_i32 = arith.constant 0 : i32
    %c0_i32_0 = arith.constant 0 : i32
    %c0_i32_1 = arith.constant 0 : i32
    return %arg0, %c0_i32, %c0_i32_0 : i32, i32, i32
  }
  func.func @transform_1(%arg0: i32) -> (i32, i32) {
    %c0_i32 = arith.constant 0 : i32
    %c0_i32_0 = arith.constant 0 : i32
    %c0_i32_1 = arith.constant 0 : i32
    return %c0_i32, %c0_i32_0 : i32, i32
  }
  func.func @transform_2(%arg0: i32) -> (i32, i32) {
    %c0_i32 = arith.constant 0 : i32
    %c0_i32_0 = arith.constant 0 : i32
    %c0_i32_1 = arith.constant 0 : i32
    return %c0_i32, %c0_i32_0 : i32, i32
  }
  func.func @transform_3(%arg0: i32) -> (i32, i32) {
    %c0_i32 = arith.constant 0 : i32
    %c0_i32_0 = arith.constant 0 : i32
    %c0_i32_1 = arith.constant 0 : i32
    return %c0_i32, %c0_i32_0 : i32, i32
  }
  func.func @transform_4(%arg0: i32) -> (i32, i32) {
    %c0_i32 = arith.constant 0 : i32
    %c0_i32_0 = arith.constant 0 : i32
    %c0_i32_1 = arith.constant 0 : i32
    return %c0_i32, %c0_i32_0 : i32, i32
  }
  func.func @transform_5(%arg0: i32) -> (i32, i32, i32) {
    %c0_i32 = arith.constant 0 : i32
    %c0_i32_0 = arith.constant 0 : i32
    %c0_i32_1 = arith.constant 0 : i32
    return %arg0, %c0_i32, %c0_i32_0 : i32, i32, i32
  }
}

</mosaic_0001>

<bundles_post_ra>
// kernel: resblock_pallas_nhwc.1
= control target key start
LH: loop header
LB: loop body
LE: loop exit
PB: predicated region body
PF: predicated region fallthrough
CT: control target
= control target key end

     0   :  { %s1112_s18 = smov 0   ;;  %s1493_s0 = inlined_call_operand.vmem [shape: f32[2,16,128], index: 0, kind: input, shape index: {}]   ;;  %s1494_s1 = inlined_call_operand.vmem [shape: f32[384,128], index: 1, kind: input, shape index: {}]   ;;  %s1495_s2 = inlined_call_operand.vmem [shape: f32[1,128], index: 2, kind: input, shape index: {}]   ;;  %s1496_s3 = inlined_call_operand.vmem [shape: f32[384,128], index: 3, kind: input, shape index: {}]   ;;  %s1497_s4 = inlined_call_operand.vmem [shape: f32[1,128], index: 4, kind: input, shape index: {}]   ;;  %s1498_s5 = inlined_call_operand.vmem [shape: f32[2,16,128], index: 5, kind: output, shape index: {}]  }
   0x1 LB: > { %s731_s19 = sadd.s32 4294967295, %s1080_s18   ;;  %p735_p0 = scmp.ge.s32.totalorder %s1080_s18, 1  ;;  %s1080_s18 = sphi %s1112_s18, %s15_s18  }
   0x2   : > { %p187_p1 = scmp.lt.s32.totalorder %s1080_s18, 3 }
   0x4   : > { %p188_p2 = pnand %p735_p0, %p187_p1 }
   0x5   : > { %v264_v0 = vld [vmem:[%s1494_s1 + $0x80] sm:$0xff] (!%p188_p2)  ;;  %v265_v1 = vld [vmem:[%s1494_s1 + $0x88] sm:$0xff] (!%p188_p2)  ;;  %v266_v5 = vld [vmem:[%s1494_s1 + $0x90] sm:$0xff] (!%p188_p2)  ;;  %p1140_p3 = scmp.lt.s32.totalorder (!%p188_p2), %s731_s19, 1  ;;  %v227_v36 = vlaneseq (!%p188_p2) }
   0x6   : > { %191 = sbr.rel (%p188_p2) target bundleno = 494 (0x1ee), region = 40  ;;  %v248_v2 = vld [vmem:[%s1494_s1] sm:$0xff] (!%p188_p2)  ;;  %v938_v3 = vpack.c.bf16 (!%p188_p2), %v265_v1, %v264_v0  ;;  %v249_v4 = vld [vmem:[%s1494_s1 + $0x8] sm:$0xff] (!%p188_p2)  ;;  %v267_v6 = vld [vmem:[%s1494_s1 + $0x98] sm:$0xff] (!%p188_p2) }
   0x7   : > { %v940_v7 = vpack.c.bf16 (!%p188_p2), %v249_v4, %v248_v2  ;;  %v942_v8 = vpack.c.bf16 (!%p188_p2), %v267_v6, %v266_v5  ;;  %v280_v9 = vld [vmem:[%s1494_s1 + $0x100] sm:$0xff] (!%p188_p2)  ;;  %v281_v10 = vld [vmem:[%s1494_s1 + $0x108] sm:$0xff] (!%p188_p2)  ;;  %v250_v11 = vld [vmem:[%s1494_s1 + $0x10] sm:$0xff] (!%p188_p2)  ;;  %v1234_v46 = vshrl.u32 (!%p188_p2), %v227_v36, 7 }
   0x8   : > { %939 = vmatprep.subr.bf16.mxu0 (!%p188_p2), %v938_v3  ;;  %v970_v12 = vpack.c.bf16 (!%p188_p2), %v281_v10, %v280_v9  ;;  %v251_v13 = vld [vmem:[%s1494_s1 + $0x18] sm:$0xff] (!%p188_p2)  ;;  %v268_v14 = vld [vmem:[%s1494_s1 + $0xa0] sm:$0xff] (!%p188_p2)  ;;  %v269_v15 = vld [vmem:[%s1494_s1 + $0xa8] sm:$0xff] (!%p188_p2) }
   0x9   : > { %941 = vmatpush3.bf16.msra.mxu0 (!%p188_p2), %v940_v7  ;;  %v944_v16 = vpack.c.bf16 (!%p188_p2), %v251_v13, %v250_v11  ;;  %v282_v17 = vld [vmem:[%s1494_s1 + $0x110] sm:$0xff] (!%p188_p2)  ;;  %v283_v18 = vld [vmem:[%s1494_s1 + $0x118] sm:$0xff] (!%p188_p2)  ;;  %v946_v19 = vpack.c.bf16 (!%p188_p2), %v269_v15, %v268_v14  ;;  %v252_v21 = vld [vmem:[%s1494_s1 + $0x20] sm:$0xff] (!%p188_p2)  ;;  %vm243_vm0 = vcmp.lt.s32.totalorder (!%p188_p2), %v1234_v46, 7  ;;  %vm234_vm1 = vcmp.lt.s32.totalorder (!%p188_p2), %v1234_v46, 1 }
   0xa   : > { %943 = vmatprep.subr.bf16.mxu0 (!%p188_p2), %v942_v8  ;;  %971 = vmatprep.subr.bf16.mxu1 (!%p188_p2), %v970_v12  ;;  %v974_v20 = vpack.c.bf16 (!%p188_p2), %v283_v18, %v282_v17  ;;  %v253_v22 = vld [vmem:[%s1494_s1 + $0x28] sm:$0xff] (!%p188_p2)  ;;  %v270_v23 = vld [vmem:[%s1494_s1 + $0xb0] sm:$0xff] (!%p188_p2)  ;;  %v271_v24 = vld [vmem:[%s1494_s1 + $0xb8] sm:$0xff] (!%p188_p2)  ;;  %vm754_vm2 = vcmp.ne.s32.totalorder (!%p188_p2), %v1234_v46, 0 }
   0xb   : > { %973 = vmatpush3.bf16.msra.mxu1 (!%p188_p2), %v970_v12  ;;  %v284_v25 = vld [vmem:[%s1494_s1 + $0x120] sm:$0xff] (!%p188_p2)  ;;  %v285_v26 = vld [vmem:[%s1494_s1 + $0x128] sm:$0xff] (!%p188_p2)  ;;  %v948_v28 = vpack.c.bf16 (!%p188_p2), %v253_v22, %v252_v21  ;;  %v286_v29 = vld [vmem:[%s1494_s1 + $0x130] sm:$0xff] (!%p188_p2)  ;;  %v950_v31 = vpack.c.bf16 (!%p188_p2), %v271_v24, %v270_v23  ;;  %v1320_v24 = vadd.s32 (!%p188_p2), 8, %v1234_v46 }
   0xc   : > { %975 = vmatprep.subr.bf16.mxu1 (!%p188_p2), %v974_v20  ;;  %v978_v27 = vpack.c.bf16 (!%p188_p2), %v285_v26, %v284_v25  ;;  %v287_v30 = vld [vmem:[%s1494_s1 + $0x138] sm:$0xff] (!%p188_p2)  ;;  %v254_v32 = vld [vmem:[%s1494_s1 + $0x30] sm:$0xff] (!%p188_p2)  ;;  %v272_v34 = vld [vmem:[%s1494_s1 + $0xc0] sm:$0xff] (!%p188_p2) }
   0xd   : > { %s1501_s19 = smov (!%p1140_p3, %s731_s19), 1  ;;  %945 = vmatpush3.bf16.msra.mxu0 %v944_v16  ;;  %v255_v33 = vld [vmem:[%s1494_s1 + $0x38] sm:$0xff]  ;;  %v273_v35 = vld [vmem:[%s1494_s1 + $0xc8] sm:$0xff]  ;;  %v982_v37 = vpack.c.bf16 %v287_v30, %v286_v29  ;;  %v288_v39 = vld [vmem:[%s1494_s1 + $0x140] sm:$0xff]  ;;  %vm755_vm3 = vcmp.ne.s32.totalorder %v1320_v24, 15 }
   0xe   : > { %947 = vmatprep.subr.bf16.mxu0 %v946_v19  ;;  %s752_s23 = sshll.u32 %s1501_s19, 4  ;;  %v952_v38 = vpack.c.bf16 %v255_v33, %v254_v32  ;;  %v289_v40 = vld [vmem:[%s1494_s1 + $0x148] sm:$0xff]  ;;  %v954_v41 = vpack.c.bf16 %v273_v35, %v272_v34  ;;  %v256_v42 = vld [vmem:[%s1494_s1 + $0x40] sm:$0xff]  ;;  %v274_v44 = vld [vmem:[%s1494_s1 + $0xd0] sm:$0xff] }
   0xf   : > { %977 = vmatpush3.bf16.msra.mxu1 %v974_v20  ;;  %s219_s10 = scalar_lea.vmem %s1493_s0, %s752_s23  ;;  %v257_v43 = vld [vmem:[%s1494_s1 + $0x48] sm:$0xff]  ;;  %v275_v45 = vld [vmem:[%s1494_s1 + $0xd8] sm:$0xff]  ;;  %v986_v47 = vpack.c.bf16 %v289_v40, %v288_v39  ;;  %v290_v50 = vld [vmem:[%s1494_s1 + $0x150] sm:$0xff]  ;;  %s224_s22 = scalar_lea.vmem %s1498_s5, %s752_s23 }
  0x10   : > { %979 = vmatprep.subr.bf16.mxu1 %v978_v27  ;;  %v1236_v48 = vld [vmem:[%s219_s10] sm:$0xff]  ;;  %v956_v49 = vpack.c.bf16 %v257_v43, %v256_v42  ;;  %v291_v51 = vld [vmem:[%s1494_s1 + $0x158] sm:$0xff]  ;;  %v1244_v52 = vld [vmem:[%s219_s10 + $0x8] sm:$0xff]  ;;  %v958_v54 = vpack.c.bf16 %v275_v45, %v274_v44 }
  0x11   : > { %949 = vmatpush3.bf16.msra.mxu0 %v948_v28  ;;  %367 = vmatprep.mubr.f32.mxu0 %v1236_v48  ;;  %v241_v53 = vrot.slane %v1236_v48, 1  ;;  %v258_v55 = vld [vmem:[%s1494_s1 + $0x50] sm:$0xff]  ;;  %v259_v56 = vld [vmem:[%s1494_s1 + $0x58] sm:$0xff]  ;;  %v242_v57 = vrot.slane %v1244_v52, 1  ;;  %v276_v58 = vld [vmem:[%s1494_s1 + $0xe0] sm:$0xff]  ;;  %v990_v60 = vpack.c.bf16 %v291_v51, %v290_v50  ;;  %v232_v17 = vrot.slane %v1236_v48, 7 }
  0x12   : > { %951 = vmatprep.subr.bf16.mxu0 %v950_v31  ;;  %v277_v59 = vld [vmem:[%s1494_s1 + $0xe8] sm:$0xff]  ;;  %v960_v62 = vpack.c.bf16 %v259_v56, %v258_v55  ;;  %v292_v63 = vld [vmem:[%s1494_s1 + $0x160] sm:$0xff]  ;;  %v278_v4 = vld [vmem:[%s1494_s1 + $0xf0] sm:$0xff]  ;;  %v233_v18 = vrot.slane %v1244_v52, 7 }
  0x13   : > { %981 = vmatpush3.bf16.msra.mxu1 %v978_v27  ;;  %v244_v61 = vsel %vm243_vm0, %v241_v53, %v242_v57  ;;  %v293_v0 = vld [vmem:[%s1494_s1 + $0x168] sm:$0xff]  ;;  %v962_v1 = vpack.c.bf16 %v277_v59, %v276_v58  ;;  %v260_v2 = vld [vmem:[%s1494_s1 + $0x60] sm:$0xff]  ;;  %v279_v5 = vld [vmem:[%s1494_s1 + $0xf8] sm:$0xff]  ;;  %v245_v35 = vsel %vm243_vm0, %v242_v57, %v241_v53 }
  0x14   : > { %983 = vmatprep.subr.bf16.mxu1 %v982_v37  ;;  %900 = vmatprep.mubr.f32.mxu1 %v244_v61  ;;  %v261_v3 = vld [vmem:[%s1494_s1 + $0x68] sm:$0xff]  ;;  %v994_v6 = vpack.c.bf16 %v293_v0, %v292_v63  ;;  %v294_v8 = vld [vmem:[%s1494_s1 + $0x170] sm:$0xff]  ;;  %v295_v9 = vld [vmem:[%s1494_s1 + $0x178] sm:$0xff]  ;;  %v966_v10 = vpack.c.bf16 %v279_v5, %v278_v4  ;;  %v236_v28 = vsel %vm234_vm1, %v233_v18, %v232_v17 }
  0x15   : > { %953 = vmatpush3.bf16.msra.mxu0 %v952_v38  ;;  %v964_v7 = vpack.c.bf16 %v261_v3, %v260_v2  ;;  %v262_v11 = vld [vmem:[%s1494_s1 + $0x70] sm:$0xff]  ;;  %v263_v12 = vld [vmem:[%s1494_s1 + $0x78] sm:$0xff]  ;;  %v483_v13 = vld [vmem:[%s1496_s3 + $0x80] sm:$0xff]  ;;  %v998_v15 = vpack.c.bf16 %v295_v9, %v294_v8  ;;  %v235_v39 = vsel %vm234_vm1, %v232_v17, %v233_v18 }
  0x16   : > { %955 = vmatprep.subr.bf16.mxu0 %v954_v41  ;;  %v484_v14 = vld [vmem:[%s1496_s3 + $0x88] sm:$0xff]  ;;  %v968_v16 = vpack.c.bf16 %v263_v12, %v262_v11  ;;  %v499_v19 = vld [vmem:[%s1496_s3 + $0x100] sm:$0xff]  ;;  %v485_v25 = vld [vmem:[%s1496_s3 + $0x90] sm:$0xff] }
  0x17   : > { %985 = vmatpush3.bf16.msra.mxu1 %v982_v37  ;;  %v500_v20 = vld [vmem:[%s1496_s3 + $0x108] sm:$0xff]  ;;  %v1002_v21 = vpack.c.bf16 %v484_v14, %v483_v13  ;;  %v467_v22 = vld [vmem:[%s1496_s3] sm:$0xff]  ;;  %v486_v26 = vld [vmem:[%s1496_s3 + $0x98] sm:$0xff] }
  0x18   : > { %987 = vmatprep.subr.bf16.mxu1 %v986_v47  ;;  %v468_v23 = vld [vmem:[%s1496_s3 + $0x8] sm:$0xff]  ;;  %v1034_v27 = vpack.c.bf16 %v500_v20, %v499_v19  ;;  %v501_v30 = vld [vmem:[%s1496_s3 + $0x110] sm:$0xff]  ;;  %v502_v31 = vld [vmem:[%s1496_s3 + $0x118] sm:$0xff]  ;;  %v1006_v32 = vpack.c.bf16 %v486_v26, %v485_v25 }
  0x19   : > { %957 = vmatpush3.bf16.msra.mxu0 %v956_v49  ;;  %v1004_v29 = vpack.c.bf16 %v468_v23, %v467_v22  ;;  %v469_v33 = vld [vmem:[%s1496_s3 + $0x10] sm:$0xff]  ;;  %v470_v34 = vld [vmem:[%s1496_s3 + $0x18] sm:$0xff]  ;;  %v487_v36 = vld [vmem:[%s1496_s3 + $0xa0] sm:$0xff]  ;;  %v1038_v38 = vpack.c.bf16 %v502_v31, %v501_v30 }
  0x1a   : > { %959 = vmatprep.subr.bf16.mxu0 %v958_v54  ;;  %v488_v37 = vld [vmem:[%s1496_s3 + $0xa8] sm:$0xff]  ;;  %v1008_v40 = vpack.c.bf16 %v470_v34, %v469_v33  ;;  %v503_v41 = vld [vmem:[%s1496_s3 + $0x120] sm:$0xff]  ;;  %v490_v49 = vld [vmem:[%s1496_s3 + $0xb8] sm:$0xff] }
  0x1b   : > { %989 = vmatpush3.bf16.msra.mxu1 %v986_v47  ;;  %v504_v42 = vld [vmem:[%s1496_s3 + $0x128] sm:$0xff]  ;;  %v1010_v43 = vpack.c.bf16 %v488_v37, %v487_v36  ;;  %v471_v44 = vld [vmem:[%s1496_s3 + $0x20] sm:$0xff]  ;;  %v489_v47 = vld [vmem:[%s1496_s3 + $0xb0] sm:$0xff] }
  0x1c   : > { %991 = vmatprep.subr.bf16.mxu1 %v990_v60  ;;  %v472_v45 = vld [vmem:[%s1496_s3 + $0x28] sm:$0xff]  ;;  %v1042_v50 = vpack.c.bf16 %v504_v42, %v503_v41  ;;  %v505_v53 = vld [vmem:[%s1496_s3 + $0x130] sm:$0xff]  ;;  %v506_v54 = vld [vmem:[%s1496_s3 + $0x138] sm:$0xff]  ;;  %v1014_v55 = vpack.c.bf16 %v490_v49, %v489_v47 }
  0x1d   : > { %961 = vmatpush3.bf16.msra.mxu0 %v960_v62  ;;  %v1012_v51 = vpack.c.bf16 %v472_v45, %v471_v44  ;;  %v473_v56 = vld [vmem:[%s1496_s3 + $0x30] sm:$0xff]  ;;  %v474_v57 = vld [vmem:[%s1496_s3 + $0x38] sm:$0xff]  ;;  %v1046_v58 = vpack.c.bf16 %v506_v54, %v505_v53  ;;  %v492_v61 = vld [vmem:[%s1496_s3 + $0xc8] sm:$0xff] }
  0x1e   : > { %963 = vmatprep.subr.bf16.mxu0 %v962_v1  ;;  %v1016_v59 = vpack.c.bf16 %v474_v57, %v473_v56  ;;  %v475_v63 = vld [vmem:[%s1496_s3 + $0x40] sm:$0xff]  ;;  %v476_v0 = vld [vmem:[%s1496_s3 + $0x48] sm:$0xff]  ;;  %v493_v5 = vld [vmem:[%s1496_s3 + $0xd0] sm:$0xff] }
  0x1f   : > { %993 = vmatpush3.bf16.msra.mxu1 %v990_v60  ;;  %v491_v60 = vld [vmem:[%s1496_s3 + $0xc0] sm:$0xff]  ;;  %v1020_v2 = vpack.c.bf16 %v476_v0, %v475_v63  ;;  %v508_v3 = vld [vmem:[%s1496_s3 + $0x148] sm:$0xff]  ;;  %v477_v8 = vld [vmem:[%s1496_s3 + $0x50] sm:$0xff] }
  0x20   : > { %995 = vmatprep.subr.bf16.mxu1 %v994_v6  ;;  %v1018_v62 = vpack.c.bf16 %v492_v61, %v491_v60  ;;  %v507_v1 = vld [vmem:[%s1496_s3 + $0x140] sm:$0xff]  ;;  %v478_v9 = vld [vmem:[%s1496_s3 + $0x58] sm:$0xff]  ;;  %v509_v11 = vld [vmem:[%s1496_s3 + $0x150] sm:$0xff] }
  0x21   : > { %965 = vmatpush3.bf16.msra.mxu0 %v964_v7  ;;  %v1050_v4 = vpack.c.bf16 %v508_v3, %v507_v1  ;;  %v510_v12 = vld [vmem:[%s1496_s3 + $0x158] sm:$0xff]  ;;  %v495_v14 = vld [vmem:[%s1496_s3 + $0xe0] sm:$0xff]  ;;  %v480_v18 = vld [vmem:[%s1496_s3 + $0x68] sm:$0xff] }
  0x22   : > { %967 = vmatprep.subr.bf16.mxu0 %v966_v10  ;;  %v1024_v10 = vpack.c.bf16 %v478_v9, %v477_v8  ;;  %v1054_v13 = vpack.c.bf16 %v510_v12, %v509_v11  ;;  %v479_v17 = vld [vmem:[%s1496_s3 + $0x60] sm:$0xff]  ;;  %v497_v23 = vld [vmem:[%s1496_s3 + $0xf0] sm:$0xff]  ;;  %v498_v25 = vld [vmem:[%s1496_s3 + $0xf8] sm:$0xff] }
  0x23   : > { %997 = vmatpush3.bf16.msra.mxu1 %v994_v6  ;;  %v494_v6 = vld [vmem:[%s1496_s3 + $0xd8] sm:$0xff]  ;;  %v511_v19 = vld [vmem:[%s1496_s3 + $0x160] sm:$0xff]  ;;  %v1028_v20 = vpack.c.bf16 %v480_v18, %v479_v17  ;;  %v1030_v26 = vpack.c.bf16 %v498_v25, %v497_v23 }
  0x24   : > { %999 = vmatprep.subr.bf16.mxu1 %v998_v15  ;;  %v1022_v7 = vpack.c.bf16 %v494_v6, %v493_v5  ;;  %v514_v31 = vld [vmem:[%s1496_s3 + $0x178] sm:$0xff] }
  0x25   : > { %969 = vmatpush3.bf16.msra.mxu0 %v968_v16 }
  0x26   : > { %1003 = vmatprep.subr.bf16.mxu0 %v1002_v21  ;;  %v512_v21 = vld [vmem:[%s1496_s3 + $0x168] sm:$0xff] }
  0x27   : > { %1001 = vmatpush3.bf16.msra.mxu1 %v998_v15  ;;  %v496_v15 = vld [vmem:[%s1496_s3 + $0xe8] sm:$0xff]  ;;  %v1058_v22 = vpack.c.bf16 %v512_v21, %v511_v19 }
  0x28   : > { %742 = vmatmul.mubr.msk.f32.vlgmr.msra.gmra.mrb[0].mxu0 %vm754_vm2, %v236_v28  ;;  %1035 = vmatprep.subr.bf16.mxu1 %v1034_v27  ;;  %v1026_v16 = vpack.c.bf16 %v496_v15, %v495_v14  ;;  %v482_v28 = vld [vmem:[%s1496_s3 + $0x78] sm:$0xff] }
  0x29   : > { %372 = vmatprep.mubr.f32.mxu0 %v1244_v52  ;;  %1005 = vmatpush3.bf16.msra.mxu0 %v1004_v29  ;;  %v513_v29 = vld [vmem:[%s1496_s3 + $0x170] sm:$0xff] }
  0x2a   : > { %901 = vmatmul.mubr.msk.f32.vlgmr.msra.gmra.mrb[0].mxu1 %vm755_vm3, %v245_v35  ;;  %1007 = vmatprep.subr.bf16.mxu0 %v1006_v32  ;;  %v1062_v32 = vpack.c.bf16 %v514_v31, %v513_v29  ;;  %v740_v35 = vld [vmem:[%s1495_s2] ss:$0 sm:$0xff] }
  0x2b   : > { %1037 = vmatpush3.bf16.msra.mxu1 %v1034_v27  ;;  %v481_v27 = vld [vmem:[%s1496_s3 + $0x70] sm:$0xff] }
  0x2c   : > { %373 = vmatmul.mubr.f32.gmra.mrb[2].mxu0 %v235_v39  ;;  %1039 = vmatprep.subr.bf16.mxu1 %v1038_v38  ;;  %v1032_v30 = vpack.c.bf16 %v482_v28, %v481_v27 }
  0x2d   : > { %1009 = vmatpush3.bf16.msra.mxu0 %v1008_v40 }
  0x2e   : > { %1011 = vmatprep.subr.bf16.mxu0 %v1010_v43 }
  0x2f   : > { %1041 = vmatpush3.bf16.msra.mxu1 %v1038_v38 }
  0x30   : > { %1043 = vmatprep.subr.bf16.mxu1 %v1042_v50 }
  0x31   : > { %1013 = vmatpush3.bf16.msra.mxu0 %v1012_v51 }
  0x32   : > { %1015 = vmatprep.subr.bf16.mxu0 %v1014_v55 }
  0x33   : > { %1045 = vmatpush3.bf16.msra.mxu1 %v1042_v50 }
  0x34   : > { %1047 = vmatprep.subr.bf16.mxu1 %v1046_v58 }
  0x35   : > { %1017 = vmatpush3.bf16.msra.mxu0 %v1016_v59 }
  0x36   : > { %1019 = vmatprep.subr.bf16.mxu0 %v1018_v62  ;;  %v745_v62 = vld [vmem:[%s1497_s4] ss:$0 sm:$0xff] }
  0x37   : > { %1049 = vmatpush3.bf16.msra.mxu1 %v1046_v58 }
  0x38   : > { %1051 = vmatprep.subr.bf16.mxu1 %v1050_v4 }
  0x39   : > { %1021 = vmatpush3.bf16.msra.mxu0 %v1020_v2 }
  0x3a   : > { %1023 = vmatprep.subr.bf16.mxu0 %v1022_v7 }
  0x3b   : > { %1053 = vmatpush3.bf16.msra.mxu1 %v1050_v4 }
  0x3c   : > { %1055 = vmatprep.subr.bf16.mxu1 %v1054_v13 }
  0x3d   : > { %1025 = vmatpush3.bf16.msra.mxu0 %v1024_v10 }
  0x3e   : > { %1027 = vmatprep.subr.bf16.mxu0 %v1026_v16 }
  0x3f   : > { %1057 = vmatpush3.bf16.msra.mxu1 %v1054_v13 }
  0x40   : > { %1059 = vmatprep.subr.bf16.mxu1 %v1058_v22 }
  0x41   : > { %1029 = vmatpush3.bf16.msra.mxu0 %v1028_v20 }
  0x42   : > { %1031 = vmatprep.subr.bf16.mxu0 %v1030_v26 }
  0x43   : > { %1061 = vmatpush3.bf16.msra.mxu1 %v1058_v22 }
  0x44   : > { %1063 = vmatprep.subr.bf16.mxu1 %v1062_v32 }
  0x45   : > { %1033 = vmatpush3.bf16.msra.mxu0 %v1032_v30 }
  0x47   : > { %1065 = vmatpush3.bf16.msra.mxu1 %v1062_v32 }
  0xfb   : > { %v788_v33 = vpop.f32.mrb[0].mxu0 }
  0xfc   : > { %v789_v34 = vpop.f32.mrb[1].mxu0 }
  0xfd   : > { %v790_v36 = vadd.f32 %v789_v34, %v788_v33  ;;  %v902_v37 = vpop.f32.mrb[0].mxu1 }
  0xfe   : > { %v444_v38 = vpop.f32.mrb[1].mxu1 }
  0xff   : > { %v791_v39 = vpop.f32.mrb[2].mxu0  ;;  %v370_v40 = vadd.f32 %v790_v36, %v740_v35 }
 0x100   : > { %v792_v41 = vpop.f32.mrb[3].mxu0 }
 0x101   : > { %v793_v42 = vadd.f32 %v792_v41, %v791_v39  ;;  %v445_v43 = vadd.f32 %v444_v38, %v370_v40 }
 0x103   : > { %v375_v44 = vadd.f32 %v793_v42, %v740_v35  ;;  %v453_v45 = vmax.f32 %v445_v43, 0.0 }
 0x105   : > { %v450_v47 = vadd.f32 %v902_v37, %v375_v44  ;;  %586 = vmatprep.mubr.f32.mxu0 %v453_v45  ;;  %v455_v51 = vrot.slane %v453_v45, 7  ;;  %v461_v53 = vrot.slane %v453_v45, 1 }
 0x107   : > { %v454_v49 = vmax.f32 %v450_v47, 0.0 }
 0x109   : > { %v456_v50 = vrot.slane %v454_v49, 7  ;;  %v462_v54 = vrot.slane %v454_v49, 1 }
 0x10b   : > { %v458_v55 = vsel %vm234_vm1, %v456_v50, %v455_v51  ;;  %v463_v56 = vsel %vm243_vm0, %v461_v53, %v462_v54  ;;  %v464_v57 = vsel %vm243_vm0, %v462_v54, %v461_v53  ;;  %v457_v58 = vsel %vm234_vm1, %v455_v51, %v456_v50 }
 0x10c   : > { %747 = vmatmul.mubr.msk.f32.vlgmr.msra.gmra.mrb[4].mxu0 %vm754_vm2, %v458_v55  ;;  %935 = vmatprep.mubr.f32.mxu1 %v463_v56 }
 0x10d   : > { %591 = vmatprep.mubr.f32.mxu0 %v454_v49  ;;  %936 = vmatmul.mubr.msk.f32.vlgmr.msra.gmra.mrb[2].mxu1 %vm755_vm3, %v464_v57 }
 0x110   : > { %592 = vmatmul.mubr.f32.gmra.mrb[6].mxu0 %v457_v58 }
 0x1df   : > { %v844_v59 = vpop.f32.mrb[4].mxu0 }
 0x1e0   : > { %v845_v60 = vpop.f32.mrb[5].mxu0  ;;  %v937_v61 = vpop.f32.mrb[2].mxu1 }
 0x1e1   : > { %v846_v63 = vadd.f32 %v845_v60, %v844_v59  ;;  %v663_v0 = vpop.f32.mrb[3].mxu1 }
 0x1e3   : > { %v589_v1 = vadd.f32 %v846_v63, %v745_v62  ;;  %v847_v2 = vpop.f32.mrb[6].mxu0 }
 0x1e4   : > { %v848_v46 = vpop.f32.mrb[7].mxu0 }
 0x1e5   : > { %v664_v3 = vadd.f32 %v663_v0, %v589_v1  ;;  %v849_v4 = vadd.f32 %v848_v46, %v847_v2 }
 0x1e7   : > { %v672_v24 = vadd.f32 %v664_v3, %v1236_v48  ;;  %v594_v5 = vadd.f32 %v849_v4, %v745_v62 }
 0x1e9   : > { %674 = vst [vmem:[%s224_s22] sm:$0xff] %v672_v24  ;;  %v669_v6 = vadd.f32 %v937_v61, %v594_v5 }
 0x1eb   : > { %v673_v7 = vadd.f32 %v669_v6, %v1244_v52 }
 0x1ed   : > { %675 = vst [vmem:[%s224_s22 + $0x8] sm:$0xff] %v673_v7 }
 0x1ee PF: > { %s15_s18 = sadd.s32 1, %s1080_s18  }
 0x1ef   : > { %p12_p4 = scmp.ge.s32.totalorder %s15_s18, 4  }
 0x1f1   :  { %14 = sbr.rel (!%p12_p4) target bundleno = 1 (0x1), region = 70 }

</bundles_post_ra>
